<compile_context>
chip_gen: v7x
topology: tpu7x:2x2x1
jax: 0.10.0
libtpu: 0.0.40
codegen_flags: <defaults>
</compile_context>

<pallas_src>
import functools
import math

import jax
import jax.numpy as jnp
import numpy as np
from jax.experimental import pallas as pl
from jax.experimental.pallas import tpu as pltpu

_MIB = 1024 * 1024


def _round_up(n, m):
    return ((n + m - 1) // m) * m


def _tpu_generation():
    """Best-effort TPU generation detection (perf knobs only, never correctness)."""
    try:
        kind = jax.devices()[0].device_kind.lower()
    except Exception:
        return "other"
    if "v5 lite" in kind or "v5e" in kind or "v5lite" in kind:
        return "v5e"
    if "v6" in kind:
        return "v6e"
    if "v7" in kind or "7x" in kind:
        return "v7x"
    return "other"


# Per-generation perf knobs:
#   act:  sigmoid/tanh dtype. v6e/v7x have bf16 EUP (~2x transcendental rate);
#         v5e has no bf16 EUP so it stays f32. exp stays f32 on all generations.
#   out:  output dtype. v5e is the most HBM-bound -> bf16 output cuts traffic ~1/3.
#   vmem: vmem_limit_bytes (physical VMEM: 128 MiB v5e/v6e, 64 MiB per TC v7x).
#   tr_max / min_grid: row-tile cap and minimum grid steps (v7x has 2 TensorCores,
#         keep >= 4 parallel steps so the second core is not idle).
_CONFIGS = {
    "v5e":   dict(act=jnp.float32,  out=jnp.bfloat16, vmem=64 * _MIB, tr_max=2048, min_grid=2),
    "v6e":   dict(act=jnp.bfloat16, out=jnp.float32,  vmem=64 * _MIB, tr_max=2048, min_grid=2),
    "v7x":   dict(act=jnp.bfloat16, out=jnp.float32,  vmem=48 * _MIB, tr_max=1024, min_grid=4),
    "other": dict(act=jnp.float32,  out=jnp.float32,  vmem=32 * _MIB, tr_max=512,  min_grid=2),
}


def _choose_tile_rows(r_pad, cap_rows, min_steps):
    """Largest 128-multiple TR that divides r_pad, fits cap_rows and leaves
    at least min(min_steps, r_pad // 128) grid steps."""
    k = r_pad // 128
    cap_d = max(1, min(cap_rows // 128, k))
    need = min(min_steps, k)
    for d in range(cap_d, 0, -1):
        if k % d == 0 and (k // d) >= need:
            return 128 * d
    return 128


def prepare_weight(w_ih, matmul_dtype=jnp.bfloat16):
    """One-time weight prep; hoist/cache this outside the per-call hot path.

    PyTorch LSTMCell weight_ih layout is [W_i; W_f; W_g; W_o] of shape (4S, S).
    The cell state is always zero in this module, so the forget gate is dead and
    dropped.  Returns (3, Sp, Sp): pre-transposed, lane-padded [W_i^T, W_g^T, W_o^T].
    """
    four_s, S = w_ih.shape
    assert four_s == 4 * S, "expected PyTorch LSTMCell weight_ih of shape (4S, S)"
    Sp = _round_up(max(S, 128), 128)
    w = jnp.stack([w_ih[0:S], w_ih[2 * S:3 * S], w_ih[3 * S:4 * S]], axis=0)   # (3,S,S)
    wt = jnp.swapaxes(w, 1, 2).astype(matmul_dtype)                            # (3,S,S)
    if Sp == S:
        return wt
    return jnp.zeros((3, Sp, Sp), matmul_dtype).at[:, :S, :S].set(wt)


def _sequence_layer_kernel(x_ref, w_ref, o_ref, *, S, Sp, alpha, act_dtype,
                           matmul_dtype, skip_max):
    """Fused zero-state LSTMCell + softmax on one row tile.

    x_ref: (TR, Sp)     rows = flattened (batch, timestep); f32 or bf16
    w_ref: (3, Sp, Sp)  [W_i^T, W_g^T, W_o^T], lane-padded
    o_ref: (TR, Sp)     probabilities (padded lanes are zero)
    """
    f32 = jnp.float32
    x = x_ref[...].astype(matmul_dtype)      # in-kernel bf16 cast (no wrapper copy)

    # Per-gate MXU passes (instead of one fused (Sp,3Sp) dot): smaller peak f32
    # live intermediates and lets the o-gate matmul overlap EUP work on i/g.
    g_i = jnp.dot(x, w_ref[0], preferred_element_type=f32)
    g_g = jnp.dot(x, w_ref[1], preferred_element_type=f32)
    t = jnp.tanh(jax.nn.sigmoid(g_i.astype(act_dtype)) *
                 jnp.tanh(g_g.astype(act_dtype)))
    g_o = jnp.dot(x, w_ref[2], preferred_element_type=f32)
    h = jax.nn.sigmoid(g_o.astype(act_dtype)) * t

    # exp argument stays f32: alpha amplifies rounding of its input, a bf16 exp
    # would cost ~alpha*2^-8 relative error on the probabilities.
    z = alpha * h.astype(f32)
    if not skip_max:
        # Only needed when alpha*|h| could overflow exp; |h| < tanh(1) ~ 0.762.
        z = z - jnp.max(z, axis=-1, keepdims=True)
    e = jnp.exp(z)

    if Sp != S:
        # Keep padded lanes out of the softmax normalization.
        lane = jax.lax.broadcasted_iota(jnp.int32, e.shape, 1)
        e = jnp.where(lane < S, e, 0.0)

    denom = jnp.sum(e, axis=-1, keepdims=True)
    # Approx EUP reciprocal: rows sum to 1 only to ~2^-12 relative error.
    o_ref[...] = (e * pl.reciprocal(denom, approx=True)).astype(o_ref.dtype)


def sequence_layer_forward(x, w_packed, *, alpha=20.0, act_dtype=None, out_dtype=None):
    """Pallas implementation of SequenceLayer.forward (LSTM branch).

    x:        (B, S, S) float32
    w_packed: (3, Sp, Sp) from prepare_weight(w_ih)   (prep hoisted out of hot path)
    returns probs: (B, S, S)
    """
    B, S, S2 = x.shape
    assert S == S2, "module requires input.shape[1] == input.shape[2]"
    Sp = int(w_packed.shape[-1])
    assert w_packed.shape == (3, Sp, Sp) and Sp == _round_up(max(S, 128), 128)
    matmul_dtype = w_packed.dtype

    cfg = _CONFIGS[_tpu_generation()]
    act_dtype = cfg["act"] if act_dtype is None else act_dtype
    out_dtype = cfg["out"] if out_dtype is None else out_dtype

    R = B * S
    aligned = (S % 128 == 0)                 # implies Sp == S and R % 128 == 0
    if aligned:
        # No pad / no wrapper cast / no output slice: saves two full HBM passes
        # around a memory-bound kernel. Cast to bf16 happens inside the kernel.
        x_in = x.reshape(R, S)
        R_pad = R
    else:
        # Pad rows only to a 128 boundary (NOT to a TR multiple) and lanes to Sp;
        # the bf16 cast is folded into the same padding pass.
        R_pad = _round_up(R, 128)
        x_in = (jnp.zeros((R_pad, Sp), matmul_dtype)
                .at[:R, :S].set(x.reshape(R, S).astype(matmul_dtype)))

    in_b = jnp.dtype(x_in.dtype).itemsize
    out_b = jnp.dtype(out_dtype).itemsize
    w_bytes = 3 * Sp * Sp * jnp.dtype(matmul_dtype).itemsize

    # Single-buffer the constant-index weight once it starts to matter for VMEM
    # headroom (large S); at small S default double-buffering is harmless.
    single_buffer_w = (2 * w_bytes > cfg["vmem"] // 8)
    w_spec_kwargs = {"pipeline_mode": pl.Buffered(1)} if single_buffer_w else {}

    # Row-tile size: as large as the VMEM budget allows (amortizes ~0.35us/step
    # and fills the MXU M dim), while keeping >= cfg['min_grid'] grid steps.
    avail = max(0, cfg["vmem"] - (1 if single_buffer_w else 2) * w_bytes - 4 * _MIB)
    bytes_per_row = Sp * (2 * in_b + 2 * out_b) + 3 * Sp * 4   # dbl-buffered I/O + f32 gates
    cap_rows = min(cfg["tr_max"], max(128, (avail // bytes_per_row) // 128 * 128))
    TR = _choose_tile_rows(R_pad, cap_rows, cfg["min_grid"])
    grid = (R_pad // TR,)

    skip_max = float(alpha) <= 80.0          # exp(0.762 * 80) << f32 max
    kernel = functools.partial(
        _sequence_layer_kernel, S=S, Sp=Sp, alpha=float(alpha),
        act_dtype=act_dtype, matmul_dtype=matmul_dtype, skip_max=skip_max)

    cost = pl.CostEstimate(
        flops=2 * R_pad * Sp * 3 * Sp,
        transcendentals=5 * R_pad * Sp,
        bytes_accessed=R_pad * Sp * (in_b + out_b) + w_bytes)

    # TODO(synk): for very large S (weight ~> VMEM budget) add a lane-tile grid
    # axis over the per-gate output dim with an online softmax across lane tiles.
    # TODO(synk): on v5e, pipeline_mode=pl.Buffered(3) on the x spec can hide the
    # exposed input DMA behind the short per-tile compute at small Sp.
    out = pl.pallas_call(
        kernel,
        out_shape=jax.ShapeDtypeStruct((R_pad, Sp), out_dtype),
        grid_spec=pltpu.PrefetchScalarGridSpec(
            num_scalar_prefetch=0,
            grid=grid,
            in_specs=[
                pl.BlockSpec((TR, Sp), lambda i: (i, 0)),                     # row tile
                pl.BlockSpec((3, Sp, Sp), lambda i: (0, 0, 0), **w_spec_kwargs),  # weight
            ],
            out_specs=pl.BlockSpec((TR, Sp), lambda i: (i, 0)),
        ),
        compiler_params=pltpu.CompilerParams(
            dimension_semantics=("parallel",),
            vmem_limit_bytes=cfg["vmem"],
        ),
        cost_estimate=cost,
    )(x_in, w_packed)

    if aligned:
        return out.reshape(B, S, S)
    return out[:R, :S].reshape(B, S, S)


def make_params(S, key):
    """Deterministic stand-in for the module's __init__/forward param creation."""
    stdv = 1.0 / math.sqrt(2048.0)
    k1, k2 = jax.random.split(key)
    eye_rep = jnp.tile(jnp.eye(S, dtype=jnp.float32), (4, 1))   # eye(S).repeat(4, 1)
    w_ih = jax.random.uniform(k1, (4 * S, S), jnp.float32, -stdv, stdv) + eye_rep
    w_hh = jax.random.uniform(k2, (4 * S, S), jnp.float32, -stdv, stdv) + eye_rep
    # w_hh is mathematically dead in the forward output (hidden state is always 0).
    return w_ih, w_hh


def _reference(x, w_ih, alpha, matmul_dtype=jnp.float32, act_dtype=jnp.float32):
    """Pure-JAX reference mirroring the PyTorch LSTMCell-with-zero-state loop."""
    B, S, _ = x.shape
    gates = jnp.einsum("bts,gs->btg", x.astype(matmul_dtype),
                       w_ih.astype(matmul_dtype),
                       preferred_element_type=jnp.float32)
    i = jax.nn.sigmoid(gates[..., 0 * S:1 * S].astype(act_dtype))
    g = jnp.tanh(gates[..., 2 * S:3 * S].astype(act_dtype))
    o = jax.nn.sigmoid(gates[..., 3 * S:4 * S].astype(act_dtype))
    h = o * jnp.tanh(i * g)
    return jax.nn.softmax(alpha * h.astype(jnp.float32), axis=-1)


if __name__ == "__main__":
    # Small shapes consistent with the module: input (batch, seq, seq)
    B, S = 2, 8
    alpha = 20.0

    key = jax.random.PRNGKey(0)
    kx, kp = jax.random.split(key)
    x = jax.random.normal(kx, (B, S, S), dtype=jnp.float32)
    w_ih, w_hh = make_params(S, kp)

    # TODO(synk): the encoder nn.LSTM in the PyTorch forward is instantiated and
    # run but its outputs are unused; it does not affect the returned probs.

    # Weight prep (pure layout plumbing) hoisted out of the per-call path.
    w_packed = prepare_weight(w_ih)

    # --- 1) precision-conservative path: f32 activations / f32 output -------
    fwd_f32 = jax.jit(functools.partial(
        sequence_layer_forward, alpha=alpha,
        act_dtype=jnp.float32, out_dtype=jnp.float32))
    probs32 = jax.block_until_ready(fwd_f32(x, w_packed))
    ref = _reference(x, w_ih, alpha, matmul_dtype=jnp.bfloat16, act_dtype=jnp.float32)
    np.testing.assert_allclose(np.asarray(probs32), np.asarray(ref),
                               rtol=2e-2, atol=2e-4)

    # --- 2) device-default path (bf16 EUP on v6e/v7x, bf16 output on v5e) ----
    fwd_auto = jax.jit(functools.partial(sequence_layer_forward, alpha=alpha))
    probs = jax.block_until_ready(fwd_auto(x, w_packed))
    cfg = _CONFIGS[_tpu_generation()]
    ref_auto = _reference(x, w_ih, alpha, matmul_dtype=jnp.bfloat16,
                          act_dtype=cfg["act"])
    pa = np.asarray(probs.astype(jnp.float32))
    ra = np.asarray(ref_auto, dtype=np.float32)
    if cfg["act"] == jnp.float32:
        # Only output rounding (possibly bf16 output on v5e) differs from (1).
        np.testing.assert_allclose(pa, ra, rtol=2e-2, atol=4e-3)
    else:
        # alpha=20 softmax exponentially amplifies bf16 activation rounding, so
        # only loose sanity bounds are meaningful; (1) carries the tight check.
        assert float(np.max(np.abs(pa - ra))) < 0.35, float(np.max(np.abs(pa - ra)))
        assert float(np.mean(np.abs(pa - ra))) < 0.05, float(np.mean(np.abs(pa - ra)))

    # Rows must still be (approximately) valid probability distributions.
    np.testing.assert_allclose(pa.sum(-1), 1.0, rtol=1e-2, atol=1e-2)
    assert probs.shape == (B, S, S)
    assert np.all(np.isfinite(pa))

    print("KERNEL_OK")
</pallas_src>

<mosaic_0001>
module attributes {stable_mosaic.version = 11 : i64} {
  func.func @_sequence_layer_kernel(%arg0: i32, %arg1: memref<128x128xbf16, #tpu.memory_space<vmem>>, %arg2: memref<3x128x128xbf16, #tpu.memory_space<vmem>>, %arg3: memref<128x128xf32, #tpu.memory_space<vmem>>) attributes {dimension_semantics = [#tpu.dimension_semantics<parallel>], iteration_bounds = array<i64: 1>, scalar_prefetch = 0 : i64, scratch_operands = 0 : i64, tpu.core_type = #tpu.core_type<tc>, window_params = [{transform_indices = @transform_0, window_bounds = array<i64: 128, 128>}, {pipeline_mode = #tpu.pipeline_mode<synchronous>, transform_indices = @transform_1, window_bounds = array<i64: 3, 128, 128>}, {transform_indices = @transform_2, window_bounds = array<i64: 128, 128>}]} {
    %c0 = arith.constant 0 : index
    %c0_0 = arith.constant 0 : index
    %0 = vector.load %arg1[%c0, %c0_0] : memref<128x128xbf16, #tpu.memory_space<vmem>>, vector<128x128xbf16>
    %c0_1 = arith.constant 0 : index
    %c0_2 = arith.constant 0 : index
    %c0_3 = arith.constant 0 : index
    %1 = vector.load %arg2[%c0_1, %c0_2, %c0_3] : memref<3x128x128xbf16, #tpu.memory_space<vmem>>, vector<1x128x128xbf16>
    %2 = vector.shape_cast %1 : vector<1x128x128xbf16> to vector<128x128xbf16>
    %cst = arith.constant dense<0.000000e+00> : vector<128x128xf32>
    %3 = tpu.matmul %0, %2, %cst {dimension_numbers = #tpu.dot_dimension_numbers<[1], [0], [0], [1], [0, 0, 1, 1], [], []>} : vector<128x128xbf16>, vector<128x128xbf16>, vector<128x128xf32> -> vector<128x128xf32>
    %c1 = arith.constant 1 : index
    %c0_4 = arith.constant 0 : index
    %c0_5 = arith.constant 0 : index
    %4 = vector.load %arg2[%c1, %c0_4, %c0_5] : memref<3x128x128xbf16, #tpu.memory_space<vmem>>, vector<1x128x128xbf16>
    %5 = vector.shape_cast %4 : vector<1x128x128xbf16> to vector<128x128xbf16>
    %cst_6 = arith.constant dense<0.000000e+00> : vector<128x128xf32>
    %6 = tpu.matmul %0, %5, %cst_6 {dimension_numbers = #tpu.dot_dimension_numbers<[1], [0], [0], [1], [0, 0, 1, 1], [], []>} : vector<128x128xbf16>, vector<128x128xbf16>, vector<128x128xf32> -> vector<128x128xf32>
    %7 = arith.negf %3 : vector<128x128xf32>
    %8 = math.exp %7 : vector<128x128xf32>
    %cst_7 = arith.constant 1.000000e+00 : f32
    %9 = vector.broadcast %cst_7 : f32 to vector<128x128xf32>
    %10 = arith.addf %9, %8 : vector<128x128xf32>
    %11 = arith.divf %9, %10 : vector<128x128xf32>
    %12 = math.tanh %6 : vector<128x128xf32>
    %13 = arith.mulf %11, %12 : vector<128x128xf32>
    %14 = math.tanh %13 : vector<128x128xf32>
    %c2 = arith.constant 2 : index
    %c0_8 = arith.constant 0 : index
    %c0_9 = arith.constant 0 : index
    %15 = vector.load %arg2[%c2, %c0_8, %c0_9] : memref<3x128x128xbf16, #tpu.memory_space<vmem>>, vector<1x128x128xbf16>
    %16 = vector.shape_cast %15 : vector<1x128x128xbf16> to vector<128x128xbf16>
    %cst_10 = arith.constant dense<0.000000e+00> : vector<128x128xf32>
    %17 = tpu.matmul %0, %16, %cst_10 {dimension_numbers = #tpu.dot_dimension_numbers<[1], [0], [0], [1], [0, 0, 1, 1], [], []>} : vector<128x128xbf16>, vector<128x128xbf16>, vector<128x128xf32> -> vector<128x128xf32>
    %18 = arith.negf %17 : vector<128x128xf32>
    %19 = math.exp %18 : vector<128x128xf32>
    %cst_11 = arith.constant 1.000000e+00 : f32
    %20 = vector.broadcast %cst_11 : f32 to vector<128x128xf32>
    %21 = arith.addf %20, %19 : vector<128x128xf32>
    %22 = arith.divf %20, %21 : vector<128x128xf32>
    %23 = arith.mulf %22, %14 : vector<128x128xf32>
    %cst_12 = arith.constant 2.000000e+01 : f32
    %24 = vector.broadcast %cst_12 : f32 to vector<128x128xf32>
    %25 = arith.mulf %24, %23 : vector<128x128xf32>
    %26 = math.exp %25 : vector<128x128xf32>
    %27 = tpu.iota {dimensions = array<i32: 1>} : vector<128x128xi32>
    %c8_i32 = arith.constant 8 : i32
    %28 = vector.broadcast %c8_i32 : i32 to vector<128x128xi32>
    %29 = arith.cmpi slt, %27, %28 : vector<128x128xi32>
    %cst_13 = arith.constant 0.000000e+00 : f32
    %30 = vector.broadcast %cst_13 : f32 to vector<128x128xf32>
    %31 = arith.select %29, %26, %30 : vector<128x128xi1>, vector<128x128xf32>
    %cst_14 = arith.constant dense<0.000000e+00> : vector<128xf32>
    %32 = vector.multi_reduction <add>, %31, %cst_14 [1] : vector<128x128xf32> to vector<128xf32>
    %33 = vector.shape_cast %32 : vector<128xf32> to vector<128x1xf32>
    %34 = tpu.reciprocal %33 {approx = true} : vector<128x1xf32> -> vector<128x1xf32>
    %35 = vector.broadcast %34 : vector<128x1xf32> to vector<128x128xf32>
    %36 = arith.mulf %31, %35 : vector<128x128xf32>
    %c0_15 = arith.constant 0 : index
    %c0_16 = arith.constant 0 : index
    %37 = vector.load %arg3[%c0_15, %c0_16] : memref<128x128xf32, #tpu.memory_space<vmem>>, vector<128x128xf32>
    tpu.vector_store %arg3[%c0_15, %c0_16], %36 {strides = array<i32>} : memref<128x128xf32, #tpu.memory_space<vmem>>, vector<128x128xf32>,
    return
  }
  func.func @transform_0(%arg0: i32) -> (i32, i32) {
    %c0_i32 = arith.constant 0 : i32
    %c0_i32_0 = arith.constant 0 : i32
    return %arg0, %c0_i32 : i32, i32
  }
  func.func @transform_1(%arg0: i32) -> (i32, i32, i32) {
    %c0_i32 = arith.constant 0 : i32
    %c0_i32_0 = arith.constant 0 : i32
    %c0_i32_1 = arith.constant 0 : i32
    %c0_i32_2 = arith.constant 0 : i32
    return %c0_i32, %c0_i32_0, %c0_i32_1 : i32, i32, i32
  }
  func.func @transform_2(%arg0: i32) -> (i32, i32) {
    %c0_i32 = arith.constant 0 : i32
    %c0_i32_0 = arith.constant 0 : i32
    return %arg0, %c0_i32 : i32, i32
  }
}

</mosaic_0001>

<bundles_post_ra>
// kernel: sequence_layer_forward.1
= control target key start
LH: loop header
LB: loop body
LE: loop exit
PB: predicated region body
PF: predicated region fallthrough
CT: control target
= control target key end

     0   :  { %7 = vsyncpa [#allocation3], 0  ;;  %s1522_s9 = smov [#allocation2]   ;;  %s1859_s0 = inlined_call_operand.vmem [shape: bf16[128,128], index: 0, kind: input, shape index: {}]   ;;  %s1860_s1 = inlined_call_operand.hbm [shape: bf16[3,128,128], index: 1, kind: input, shape index: {}]   ;;  %s1861_s2 = inlined_call_operand.vmem [shape: f32[128,128], index: 2, kind: output, shape index: {}]  }
   0x1   :  { %s15_s10 = sshll.u32 %s1522_s9, 4  ;;  %s1498_s13 = scalar_lea.hbm %s1860_s1, 3072  ;;  %s16_s10 = int_to_ptr.vmem [resolvable:$true] %s15_s10 }
   0x2   :  { %p1499_p0 = scmp.ne.s32.totalorder %s1860_s1, %s1498_s13  ;;  %p1502_p1 = scmp.lt.u32.totalorder %s1498_s13, %s1860_s1 }
   0x4   :  { %p1504_p2 = pnand %p1502_p1, %p1499_p0 }
   0x6   :  { %1507 = shalt.err (!%p1504_p2)
}
   0x7   :  { %s1508_s18 = scalar_lea.vmem %s16_s10, 3072  ;;  %p1513_p4 = scmp.lt.s32.totalorder %s16_s10, %s16_s10 }
   0x8   :  { %p1509_p3 = scmp.ne.s32.totalorder %s16_s10, %s1508_s18  ;;  %p1514_p5 = scmp.lt.s32.totalorder %s1508_s18, %s1508_s18 }
   0xa   :  { %p1515_p6 = por %p1514_p5, %p1513_p4 }
   0xc   :  { %p1516_p7 = pnand %p1515_p6, %p1509_p3 }
   0xe   :  { %1519 = shalt.err (!%p1516_p7)
}
   0xf   :  { %s1523_s19 = smov 64   ;;  %s1524_s20 = smov 4  }
  0x10   :  { %21 = dma.hbm_to_vmem [thread:$0]  %s1860_s1, 3072, %s16_s10, [#allocation3], %s1523_s19, %s1523_s19, %s1524_s20  }
  0x11   :  { %1520 = dma.done.wait [#allocation3], 3072  }
  0x12   :  { %1521 = vsyncadd [#allocation3], 4294964224  ;;  %v1210_v0 = vld [vmem:[#allocation2] sm:$0xff]   ;;  %v1212_v2 = vld [vmem:[#allocation2 + $0x8] sm:$0xff]  }
  0x13   :  { %v1211_v1 = vld [vmem:[#allocation2 + $0x40] sm:$0xff]   ;;  %1095 = vmatprep.subr.bf16.mxu0 %v1210_v0  ;;  %v1213_v3 = vld [vmem:[#allocation2 + $0x48] sm:$0xff]   ;;  %v1214_v4 = vld [vmem:[#allocation2 + $0x10] sm:$0xff]  }
  0x14   :  { %1127 = vmatprep.subr.bf16.mxu1 %v1211_v1  ;;  %1096 = vmatpush3.bf16.msra.mxu0 %v1210_v0  ;;  %v1215_v5 = vld [vmem:[#allocation2 + $0x50] sm:$0xff]   ;;  %v1216_v6 = vld [vmem:[#allocation2 + $0x18] sm:$0xff]   ;;  %v1218_v8 = vld [vmem:[#allocation2 + $0x20] sm:$0xff]  }
  0x15   :  { %1128 = vmatpush3.bf16.msra.mxu1 %v1211_v1  ;;  %1097 = vmatprep.subr.bf16.mxu0 %v1212_v2  ;;  %v1217_v7 = vld [vmem:[#allocation2 + $0x58] sm:$0xff]   ;;  %v1219_v9 = vld [vmem:[#allocation2 + $0x60] sm:$0xff]   ;;  %v1220_v10 = vld [vmem:[#allocation2 + $0x28] sm:$0xff]  }
  0x16   :  { %1129 = vmatprep.subr.bf16.mxu1 %v1213_v3  ;;  %v1555_v11 = vld [vmem:[%s1859_s0] sm:$0xff]   ;;  %v1221_v12 = vld [vmem:[#allocation2 + $0x68] sm:$0xff]   ;;  %v1222_v13 = vld [vmem:[#allocation2 + $0x30] sm:$0xff]  }
  0x17   :  { %1111 = vmatprep.mubr.bf16.mxu0 %v1555_v11  ;;  %1143 = vmatprep.mubr.bf16.mxu1 %v1555_v11  ;;  %v1223_v14 = vld [vmem:[#allocation2 + $0x70] sm:$0xff]   ;;  %v1224_v15 = vld [vmem:[#allocation2 + $0x38] sm:$0xff]   ;;  %v1228_v17 = vld [vmem:[#allocation2 + $0x80] sm:$0xff]  }
  0x18   :  { %1098 = vmatpush3.bf16.msra.mxu0 %v1212_v2  ;;  %v1225_v16 = vld [vmem:[#allocation2 + $0x78] sm:$0xff]   ;;  %v1562_v18 = vld [vmem:[%s1859_s0 + $0x8] sm:$0xff]   ;;  %v1230_v20 = vld [vmem:[%s1859_s0 + $0x10] sm:$0xff]  }
  0x19   :  { %1130 = vmatpush3.bf16.msra.mxu1 %v1213_v3  ;;  %1099 = vmatprep.subr.bf16.mxu0 %v1214_v4  ;;  %v1229_v19 = vld [vmem:[#allocation2 + $0x88] sm:$0xff]   ;;  %v1232_v21 = vld [vmem:[#allocation2 + $0x90] sm:$0xff]   ;;  %v1231_v22 = vld [vmem:[%s1859_s0 + $0x18] sm:$0xff]  }
  0x1a   :  { %1131 = vmatprep.subr.bf16.mxu1 %v1215_v5  ;;  %v1233_v23 = vld [vmem:[#allocation2 + $0x98] sm:$0xff]   ;;  %v1234_v24 = vld [vmem:[%s1859_s0 + $0x20] sm:$0xff]   ;;  %v1235_v26 = vld [vmem:[%s1859_s0 + $0x28] sm:$0xff]  }
  0x1b   :  { %v1236_v25 = vld [vmem:[#allocation2 + $0xa0] sm:$0xff]   ;;  %v1237_v27 = vld [vmem:[#allocation2 + $0xa8] sm:$0xff]   ;;  %v1238_v28 = vld [vmem:[%s1859_s0 + $0x30] sm:$0xff]  }
  0x1c   :  { %1100 = vmatpush3.bf16.msra.mxu0 %v1214_v4  ;;  %v1240_v29 = vld [vmem:[#allocation2 + $0xb0] sm:$0xff]   ;;  %v1239_v30 = vld [vmem:[%s1859_s0 + $0x38] sm:$0xff]  }
  0x1d   :  { %1132 = vmatpush3.bf16.msra.mxu1 %v1215_v5  ;;  %1101 = vmatprep.subr.bf16.mxu0 %v1216_v6  ;;  %v1241_v31 = vld [vmem:[#allocation2 + $0xb8] sm:$0xff]  }
  0x1e   :  { %1133 = vmatprep.subr.bf16.mxu1 %v1217_v7 }
  0x20   :  { %1102 = vmatpush3.bf16.msra.mxu0 %v1216_v6 }
  0x21   :  { %1134 = vmatpush3.bf16.msra.mxu1 %v1217_v7  ;;  %1103 = vmatprep.subr.bf16.mxu0 %v1218_v8 }
  0x22   :  { %1135 = vmatprep.subr.bf16.mxu1 %v1219_v9 }
  0x24   :  { %1104 = vmatpush3.bf16.msra.mxu0 %v1218_v8 }
  0x25   :  { %1136 = vmatpush3.bf16.msra.mxu1 %v1219_v9  ;;  %1105 = vmatprep.subr.bf16.mxu0 %v1220_v10 }
  0x26   :  { %1137 = vmatprep.subr.bf16.mxu1 %v1221_v12 }
  0x28   :  { %1106 = vmatpush3.bf16.msra.mxu0 %v1220_v10 }
  0x29   :  { %1138 = vmatpush3.bf16.msra.mxu1 %v1221_v12  ;;  %1107 = vmatprep.subr.bf16.mxu0 %v1222_v13 }
  0x2a   :  { %1139 = vmatprep.subr.bf16.mxu1 %v1223_v14 }
  0x2c   :  { %1108 = vmatpush3.bf16.msra.mxu0 %v1222_v13 }
  0x2d   :  { %1140 = vmatpush3.bf16.msra.mxu1 %v1223_v14  ;;  %1109 = vmatprep.subr.bf16.mxu0 %v1224_v15 }
  0x2e   :  { %1141 = vmatprep.subr.bf16.mxu1 %v1225_v16 }
  0x30   :  { %1110 = vmatpush3.bf16.msra.mxu0 %v1224_v15 }
  0x31   :  { %1142 = vmatpush3.bf16.msra.mxu1 %v1225_v16  ;;  %1159 = vmatprep.subr.bf16.mxu0 %v1228_v17 }
  0x32   :  { %1191 = vmatprep.subr.bf16.mxu1 %v1228_v17 }
  0x33   :  { %1112 = vmatmul.mubr.bf16.vlgmr.msra.gmra.mrb[0].mxu0 %v1562_v18 }
  0x34   :  { %1144 = vmatmul.mubr.bf16.vlgmr.msra.gmra.mrb[0].mxu1 %v1562_v18  ;;  %1160 = vmatpush3.bf16.msra.mxu0 %v1228_v17 }
  0x35   :  { %1199 = vmatpush3.bf16.msra.mxu1 %v1228_v17  ;;  %1161 = vmatprep.subr.bf16.mxu0 %v1229_v19 }
  0x36   :  { %1192 = vmatprep.subr.bf16.mxu1 %v1229_v19  ;;  %1115 = vmatprep.mubr.bf16.mxu0 %v1230_v20 }
  0x37   :  { %1147 = vmatprep.mubr.bf16.mxu1 %v1230_v20 }
  0x38   :  { %1162 = vmatpush3.bf16.msra.mxu0 %v1229_v19 }
  0x39   :  { %1200 = vmatpush3.bf16.msra.mxu1 %v1229_v19  ;;  %1163 = vmatprep.subr.bf16.mxu0 %v1232_v21 }
  0x3a   :  { %1193 = vmatprep.subr.bf16.mxu1 %v1232_v21 }
  0x3b   :  { %1116 = vmatmul.mubr.bf16.gmra.mrb[4].mxu0 %v1231_v22 }
  0x3c   :  { %1148 = vmatmul.mubr.bf16.gmra.mrb[4].mxu1 %v1231_v22  ;;  %1164 = vmatpush3.bf16.msra.mxu0 %v1232_v21 }
  0x3d   :  { %1201 = vmatpush3.bf16.msra.mxu1 %v1232_v21  ;;  %1165 = vmatprep.subr.bf16.mxu0 %v1233_v23 }
  0x3e   :  { %1194 = vmatprep.subr.bf16.mxu1 %v1233_v23  ;;  %1119 = vmatprep.mubr.bf16.mxu0 %v1234_v24 }
  0x3f   :  { %1151 = vmatprep.mubr.bf16.mxu1 %v1234_v24 }
  0x40   :  { %1166 = vmatpush3.bf16.msra.mxu0 %v1233_v23 }
  0x41   :  { %1202 = vmatpush3.bf16.msra.mxu1 %v1233_v23  ;;  %1167 = vmatprep.subr.bf16.mxu0 %v1236_v25 }
  0x42   :  { %1195 = vmatprep.subr.bf16.mxu1 %v1236_v25 }
  0x43   :  { %1120 = vmatmul.mubr.bf16.gmra.mrb[8].mxu0 %v1235_v26 }
  0x44   :  { %1152 = vmatmul.mubr.bf16.gmra.mrb[8].mxu1 %v1235_v26  ;;  %1168 = vmatpush3.bf16.msra.mxu0 %v1236_v25 }
  0x45   :  { %1203 = vmatpush3.bf16.msra.mxu1 %v1236_v25  ;;  %1169 = vmatprep.subr.bf16.mxu0 %v1237_v27 }
  0x46   :  { %1196 = vmatprep.subr.bf16.mxu1 %v1237_v27  ;;  %1123 = vmatprep.mubr.bf16.mxu0 %v1238_v28 }
  0x47   :  { %1155 = vmatprep.mubr.bf16.mxu1 %v1238_v28 }
  0x48   :  { %1170 = vmatpush3.bf16.msra.mxu0 %v1237_v27 }
  0x49   :  { %1204 = vmatpush3.bf16.msra.mxu1 %v1237_v27  ;;  %1171 = vmatprep.subr.bf16.mxu0 %v1240_v29 }
  0x4a   :  { %1197 = vmatprep.subr.bf16.mxu1 %v1240_v29 }
  0x4b   :  { %1124 = vmatmul.mubr.bf16.gmra.mrb[12].mxu0 %v1239_v30 }
  0x4c   :  { %1156 = vmatmul.mubr.bf16.gmra.mrb[12].mxu1 %v1239_v30  ;;  %1172 = vmatpush3.bf16.msra.mxu0 %v1240_v29 }
  0x4d   :  { %1205 = vmatpush3.bf16.msra.mxu1 %v1240_v29  ;;  %1173 = vmatprep.subr.bf16.mxu0 %v1241_v31 }
  0x4e   :  { %1198 = vmatprep.subr.bf16.mxu1 %v1241_v31  ;;  %1175 = vmatprep.mubr.bf16.mxu0 %v1555_v11 }
  0x4f   :  { %1183 = vmatprep.mubr.bf16.mxu1 %v1234_v24 }
  0x50   :  { %1174 = vmatpush3.bf16.msra.mxu0 %v1241_v31 }
  0x51   :  { %1206 = vmatpush3.bf16.msra.mxu1 %v1241_v31 }
  0x53   :  { %1176 = vmatmul.mubr.bf16.vlgmr.msra.gmra.mrb[16].mxu0 %v1562_v18 }
  0x54   :  { %1184 = vmatmul.mubr.bf16.vlgmr.msra.gmra.mrb[16].mxu1 %v1235_v26  ;;  %1179 = vmatprep.mubr.bf16.mxu0 %v1230_v20 }
  0x55   :  { %1187 = vmatprep.mubr.bf16.mxu1 %v1238_v28 }
  0x5b   :  { %1180 = vmatmul.mubr.bf16.gmra.mrb[20].mxu0 %v1231_v22 }
  0x5c   :  { %1188 = vmatmul.mubr.bf16.gmra.mrb[20].mxu1 %v1239_v30 }
 0x106   :  { %v1113_v32 = vpop.f32.mrb[0].mxu0 }
 0x107   :  { %v1009_v33 = vmul.f32 -1.442695, %v1113_v32  ;;  %v1145_v34 = vpop.f32.mrb[0].mxu1  ;;  %v188_v35 = vpop.f32.mrb[1].mxu0 }
 0x108   :  { %1242 = vtanh.f32 %v1145_v34  ;;  %v1007_v36 = vmul.f32 -1.442695, %v188_v35  ;;  %v350_v37 = vpop.f32.mrb[1].mxu1  ;;  %v1114_v38 = vpop.f32.mrb[2].mxu0 }
 0x109   :  { %1244 = vpow2.f32 %v1009_v33  ;;  %v1010_v39 = vmul.f32 -1.442695, %v1114_v38  ;;  %v1146_v40 = vpop.f32.mrb[2].mxu1  ;;  %v191_v41 = vpop.f32.mrb[3].mxu0 }
 0x10a   :  { %1246 = vpow2.f32 %v1007_v36  ;;  %v1008_v42 = vmul.f32 -1.442695, %v191_v41  ;;  %v353_v43 = vpop.f32.mrb[3].mxu1 }
 0x10b   :  { %1248 = vtanh.f32 %v350_v37 }
 0x10c   :  { %1250 = vpow2.f32 %v1010_v39 }
 0x10d   :  { %1252 = vtanh.f32 %v1146_v40 }
 0x10e   :  { %1254 = vpow2.f32 %v1008_v42  ;;  %v1117_v44 = vpop.f32.mrb[4].mxu0 }
 0x10f   :  { %1256 = vtanh.f32 %v353_v43  ;;  %v1013_v45 = vmul.f32 -1.442695, %v1117_v44  ;;  %v1149_v46 = vpop.f32.mrb[4].mxu1  ;;  %v204_v47 = vpop.f32.mrb[5].mxu0 }
 0x110   :  { %1258 = vtanh.f32 %v1149_v46  ;;  %v1011_v48 = vmul.f32 -1.442695, %v204_v47  ;;  %v366_v49 = vpop.f32.mrb[5].mxu1  ;;  %v1118_v50 = vpop.f32.mrb[6].mxu0 }
 0x111   :  { %1260 = vpow2.f32 %v1013_v45  ;;  %v1014_v51 = vmul.f32 -1.442695, %v1118_v50  ;;  %v1150_v52 = vpop.f32.mrb[6].mxu1  ;;  %v207_v53 = vpop.f32.mrb[7].mxu0 }
 0x112   :  { %v1243_v54 = vpop.eup %1242  ;;  %1262 = vpow2.f32 %v1011_v48  ;;  %v369_v55 = vpop.f32.mrb[7].mxu1  ;;  %v1012_v59 = vmul.f32 -1.442695, %v207_v53 }
 0x113   :  { %v1245_v56 = vpop.eup %1244  ;;  %1264 = vtanh.f32 %v366_v49 }
 0x114   :  { %v1247_v57 = vpop.eup %1246  ;;  %v463_v58 = vadd.f32 1.0, %v1245_v56  ;;  %1266 = vpow2.f32 %v1014_v51 }
 0x115   :  { %v1249_v60 = vpop.eup %1248  ;;  %v461_v61 = vadd.f32 1.0, %v1247_v57  ;;  %1268 = vtanh.f32 %v1150_v52 }
 0x116   :  { %v1251_v62 = vpop.eup %1250  ;;  %1270 = vrcp.f32 %v463_v58  ;;  %v1121_v63 = vpop.f32.mrb[8].mxu0 }
 0x117   :  { %v1253_v0 = vpop.eup %1252  ;;  %1272 = vrcp.f32 %v461_v61  ;;  %v464_v1 = vadd.f32 1.0, %v1251_v62  ;;  %v1153_v2 = vpop.f32.mrb[8].mxu1  ;;  %v1017_v5 = vmul.f32 -1.442695, %v1121_v63 }
 0x118   :  { %v220_v3 = vpop.f32.mrb[9].mxu0  ;;  %v1255_v4 = vpop.eup %1254  ;;  %1274 = vpow2.f32 %v1012_v59 }
 0x119   :  { %v382_v6 = vpop.f32.mrb[9].mxu1  ;;  %v1122_v7 = vpop.f32.mrb[10].mxu0  ;;  %1276 = vrcp.f32 %v464_v1  ;;  %v462_v9 = vadd.f32 1.0, %v1255_v4  ;;  %v1015_v17 = vmul.f32 -1.442695, %v220_v3 }
 0x11a   :  { %v1257_v8 = vpop.eup %1256  ;;  %v1586_v10 = vpop.f32.mrb[10].mxu1  ;;  %1278 = vtanh.f32 %v369_v55  ;;  %v1018_v38 = vmul.f32 -1.442695, %v1122_v7 }
 0x11b   :  { %v1588_v11 = vpop.f32.mrb[11].mxu0  ;;  %v1259_v12 = vpop.eup %1258  ;;  %1280 = vrcp.f32 %v462_v9 }
 0x11c   :  { %v1590_v13 = vpop.f32.mrb[11].mxu1  ;;  %v1261_v14 = vpop.eup %1260  ;;  %1282 = vpow2.f32 %v1017_v5  ;;  %v1016_v61 = vmul.f32 -1.442695, %v1588_v11 }
 0x11d   :  { %v1263_v15 = vpop.eup %1262  ;;  %v467_v16 = vadd.f32 1.0, %v1261_v14  ;;  %1284 = vtanh.f32 %v1153_v2 }
 0x11e   :  { %v1265_v18 = vpop.eup %1264  ;;  %v465_v19 = vadd.f32 1.0, %v1263_v15  ;;  %v1125_v21 = vpop.f32.mrb[12].mxu0 }
 0x11f   :  { %v1267_v20 = vpop.eup %1266  ;;  %1286 = vrcp.f32 %v467_v16  ;;  %v1592_v24 = vpop.f32.mrb[12].mxu1  ;;  %v1021_v1 = vmul.f32 -1.442695, %v1125_v21 }
 0x120   :  { %v1269_v22 = vpop.eup %1268  ;;  %1288 = vrcp.f32 %v465_v19  ;;  %v468_v23 = vadd.f32 1.0, %v1267_v20  ;;  %v1594_v25 = vpop.f32.mrb[13].mxu0 }
 0x121   :  { %v1271_v26 = vpop.eup %1270  ;;  %1290 = vpow2.f32 %v1015_v17  ;;  %v1596_v27 = vpop.f32.mrb[13].mxu1 }
 0x122   :  { %v1598_v28 = vpop.f32.mrb[14].mxu0  ;;  %v1273_v29 = vpop.eup %1272  ;;  %v527_v30 = vmul.f32 %v1271_v26, %v1243_v54  ;;  %1292 = vrcp.f32 %v468_v23 }
 0x123   :  { %v1600_v31 = vpop.f32.mrb[14].mxu1  ;;  %v1602_v32 = vpop.f32.mrb[15].mxu0  ;;  %v525_v34 = vmul.f32 %v1273_v29, %v1249_v60  ;;  %1294 = vtanh.f32 %v382_v6  ;;  %v1022_v21 = vmul.f32 -1.442695, %v1598_v28 }
 0x124   :  { %v1275_v33 = vpop.eup %1274  ;;  %v1604_v35 = vpop.f32.mrb[15].mxu1  ;;  %1296 = vtanh.f32 %v527_v30  ;;  %v1020_v26 = vmul.f32 -1.442695, %v1602_v32 }
 0x125   :  { %v1277_v36 = vpop.eup %1276  ;;  %v466_v37 = vadd.f32 1.0, %v1275_v33  ;;  %1298 = vtanh.f32 %v525_v34 }
 0x126   :  { %v1279_v39 = vpop.eup %1278  ;;  %v528_v40 = vmul.f32 %v1277_v36, %v1253_v0  ;;  %v1606_v44 = vpop.f32.mrb[16].mxu0 }
 0x127   :  { %v1281_v41 = vpop.eup %1280  ;;  %1300 = vrcp.f32 %v466_v37  ;;  %v1608_v47 = vpop.f32.mrb[16].mxu1  ;;  %v1033_v36 = vmul.f32 -1.442695, %v1606_v44 }
 0x128   :  { %v1283_v42 = vpop.eup %1282  ;;  %1302 = vtanh.f32 %v528_v40  ;;  %v526_v43 = vmul.f32 %v1281_v41, %v1257_v8  ;;  %v1610_v48 = vpop.f32.mrb[17].mxu0  ;;  %v1041_v32 = vmul.f32 -1.442695, %v1608_v47 }
 0x129   :  { %v1285_v45 = vpop.eup %1284  ;;  %v471_v46 = vadd.f32 1.0, %v1283_v42  ;;  %1304 = vpow2.f32 %v1018_v38  ;;  %v1612_v50 = vpop.f32.mrb[17].mxu1  ;;  %v1031_v41 = vmul.f32 -1.442695, %v1610_v48 }
 0x12a   :  { %v1287_v49 = vpop.eup %1286  ;;  %1306 = vtanh.f32 %v526_v43  ;;  %v1614_v51 = vpop.f32.mrb[18].mxu0  ;;  %v1039_v44 = vmul.f32 -1.442695, %v1612_v50 }
 0x12b   :  { %v1289_v52 = vpop.eup %1288  ;;  %v531_v53 = vmul.f32 %v1287_v49, %v1259_v12  ;;  %1308 = vrcp.f32 %v471_v46  ;;  %v1616_v54 = vpop.f32.mrb[18].mxu1  ;;  %v1019_v12 = vmul.f32 -1.442695, %v1594_v25  ;;  %v1034_v47 = vmul.f32 -1.442695, %v1614_v51 }
 0x12c   :  { %v1618_v55 = vpop.f32.mrb[19].mxu0  ;;  %v1291_v56 = vpop.eup %1290  ;;  %v529_v57 = vmul.f32 %v1289_v52, %v1265_v18  ;;  %1310 = vtanh.f32 %v1586_v10  ;;  %v1042_v52 = vmul.f32 -1.442695, %v1616_v54 }
 0x12d   :  { %v1621_v58 = vpop.f32.mrb[19].mxu1  ;;  %v1293_v59 = vpop.eup %1292  ;;  %1312 = vtanh.f32 %v531_v53  ;;  %v469_v60 = vadd.f32 1.0, %v1291_v56  ;;  %v1032_v50 = vmul.f32 -1.442695, %v1618_v55 }
 0x12e   :  { %v1295_v62 = vpop.eup %1294  ;;  %1314 = vtanh.f32 %v529_v57  ;;  %v532_v63 = vmul.f32 %v1293_v59, %v1269_v22  ;;  %v1628_v3 = vpop.f32.mrb[20].mxu0 }
 0x12f   :  { %v1624_v0 = vpop.eup %1296  ;;  %1316 = vrcp.f32 %v469_v60  ;;  %v1630_v5 = vpop.f32.mrb[20].mxu1 }
 0x130   :  { %v1626_v2 = vpop.eup %1298  ;;  %1318 = vtanh.f32 %v532_v63  ;;  %v1632_v6 = vpop.f32.mrb[21].mxu0 }
 0x131   :  { %v1301_v4 = vpop.eup %1300  ;;  %1320 = vpow2.f32 %v1016_v61  ;;  %v1637_v9 = vpop.f32.mrb[21].mxu1 }
 0x132   :  { %v1634_v7 = vpop.eup %1302  ;;  %v530_v8 = vmul.f32 %v1301_v4, %v1279_v39  ;;  %1322 = vtanh.f32 %v1590_v13  ;;  %v1639_v10 = vpop.f32.mrb[22].mxu0 }
 0x133   :  { %v1305_v11 = vpop.eup %1304  ;;  %1324 = vpow2.f32 %v1021_v1  ;;  %v1642_v14 = vpop.f32.mrb[22].mxu1  ;;  %v1040_v1 = vmul.f32 -1.442695, %v1621_v58 }
 0x134   :  { %v1644_v15 = vpop.f32.mrb[23].mxu0  ;;  %v1646_v16 = vpop.eup %1306  ;;  %1326 = vtanh.f32 %v530_v8  ;;  %v472_v17 = vadd.f32 1.0, %v1305_v11 }
 0x135   :  { %v1648_v18 = vpop.f32.mrb[23].mxu1  ;;  %v1309_v19 = vpop.eup %1308  ;;  %1328 = vtanh.f32 %v1592_v24 }
 0x136   :  { %v1311_v13 = vpop.eup %1310  ;;  %v535_v20 = vmul.f32 %v1309_v19, %v1285_v45  ;;  %1330 = vrcp.f32 %v472_v17 }
 0x137   :  { %v1652_v22 = vpop.eup %1312  ;;  %1332 = vpow2.f32 %v1019_v12 }
 0x138   :  { %v1654_v23 = vpop.eup %1314  ;;  %1334 = vtanh.f32 %v535_v20 }
 0x139   :  { %v1317_v25 = vpop.eup %1316  ;;  %1336 = vtanh.f32 %v1596_v27 }
 0x13a   :  { %v1658_v29 = vpop.eup %1318  ;;  %v533_v30 = vmul.f32 %v1317_v25, %v1295_v62  ;;  %1338 = vpow2.f32 %v1022_v21 }
 0x13b   :  { %v1321_v24 = vpop.eup %1320  ;;  %1340 = vtanh.f32 %v1600_v31 }
 0x13c   :  { %v1323_v33 = vpop.eup %1322  ;;  %1342 = vtanh.f32 %v533_v30  ;;  %v470_v28 = vadd.f32 1.0, %v1321_v24 }
 0x13d   :  { %v1325_v34 = vpop.eup %1324  ;;  %1344 = vpow2.f32 %v1020_v26 }
 0x13e   :  { %v1662_v37 = vpop.eup %1326  ;;  %1346 = vrcp.f32 %v470_v28  ;;  %v475_v27 = vadd.f32 1.0, %v1325_v34 }
 0x13f   :  { %v1329_v38 = vpop.eup %1328  ;;  %1348 = vtanh.f32 %v1604_v35 }
 0x140   :  { %v1331_v39 = vpop.eup %1330  ;;  %1350 = vrcp.f32 %v475_v27  ;;  %v1045_v27 = vmul.f32 -1.442695, %v1630_v5 }
 0x141   :  { %v1333_v40 = vpop.eup %1332  ;;  %v536_v31 = vmul.f32 %v1331_v39, %v1311_v13  ;;  %1352 = vpow2.f32 %v1033_v36  ;;  %v1035_v39 = vmul.f32 -1.442695, %v1632_v6  ;;  %v1046_v6 = vmul.f32 -1.442695, %v1642_v14 }
 0x142   :  { %v1667_v42 = vpop.eup %1334  ;;  %v473_v43 = vadd.f32 1.0, %v1333_v40  ;;  %1354 = vpow2.f32 %v1041_v32 }
 0x143   :  { %v1337_v45 = vpop.eup %1336  ;;  %1356 = vtanh.f32 %v536_v31  ;;  %v1043_v31 = vmul.f32 -1.442695, %v1637_v9  ;;  %v1036_v9 = vmul.f32 -1.442695, %v1644_v15 }
 0x144   :  { %v1339_v46 = vpop.eup %1338  ;;  %1358 = vrcp.f32 %v473_v43 }
 0x145   :  { %v1341_v35 = vpop.eup %1340  ;;  %v476_v49 = vadd.f32 1.0, %v1339_v46  ;;  %1360 = vpow2.f32 %v1031_v41 }
 0x146   :  { %v1672_v53 = vpop.eup %1342  ;;  %1362 = vpow2.f32 %v1039_v44  ;;  %v1038_v44 = vmul.f32 -1.442695, %v1639_v10 }
 0x147   :  { %v1345_v48 = vpop.eup %1344  ;;  %1364 = vrcp.f32 %v476_v49 }
 0x148   :  { %v1347_v56 = vpop.eup %1346  ;;  %v474_v57 = vadd.f32 1.0, %v1345_v48  ;;  %1366 = vpow2.f32 %v1034_v47 }
 0x149   :  { %v1349_v59 = vpop.eup %1348  ;;  %v534_v60 = vmul.f32 %v1347_v56, %v1323_v33  ;;  %1368 = vpow2.f32 %v1042_v52  ;;  %v1037_v33 = vmul.f32 -1.442695, %v1628_v3 }
 0x14a   :  { %v1351_v61 = vpop.eup %1350  ;;  %1370 = vrcp.f32 %v474_v57 }
 0x14b   :  { %v1353_v51 = vpop.eup %1352  ;;  %1372 = vtanh.f32 %v534_v60  ;;  %v539_v62 = vmul.f32 %v1351_v61, %v1329_v38 }
 0x14c   :  { %v1355_v63 = vpop.eup %1354  ;;  %v769_v54 = vadd.f32 1.0, %v1353_v51  ;;  %1374 = vpow2.f32 %v1032_v50  ;;  %v879_v51 = vlaneseq }
 0x14d   :  { %v1676_v4 = vpop.eup %1356  ;;  %1376 = vtanh.f32 %v539_v62  ;;  %v777_v8 = vadd.f32 1.0, %v1355_v63 }
 0x14e   :  { %v1359_v11 = vpop.eup %1358  ;;  %1378 = vrcp.f32 %v769_v54 }
 0x14f   :  { %v1361_v55 = vpop.eup %1360  ;;  %v537_v12 = vmul.f32 %v1359_v11, %v1337_v45  ;;  %1380 = vrcp.f32 %v777_v8 }
 0x150   :  { %v1363_v17 = vpop.eup %1362  ;;  %v767_v19 = vadd.f32 1.0, %v1361_v55  ;;  %1382 = vpow2.f32 %v1040_v1 }
 0x151   :  { %v1365_v13 = vpop.eup %1364  ;;  %1384 = vtanh.f32 %v537_v12  ;;  %v775_v20 = vadd.f32 1.0, %v1363_v17 }
 0x152   :  { %v1367_v21 = vpop.eup %1366  ;;  %v540_v25 = vmul.f32 %v1365_v13, %v1341_v35  ;;  %1386 = vrcp.f32 %v767_v19  ;;  %v1703_v19 = vand.u32 127, %v879_v51 }
 0x153   :  { %v1369_v26 = vpop.eup %1368  ;;  %1388 = vrcp.f32 %v775_v20  ;;  %v770_v58 = vadd.f32 1.0, %v1367_v21 }
 0x154   :  { %v1371_v30 = vpop.eup %1370  ;;  %1390 = vtanh.f32 %v540_v25  ;;  %v778_v24 = vadd.f32 1.0, %v1369_v26  ;;  %vm881_vm0 = vcmp.lt.s32.totalorder %v1703_v19, 8 }
 0x155   :  { %v1679_v28 = vpop.eup %1372  ;;  %v538_v34 = vmul.f32 %v1371_v30, %v1349_v59  ;;  %1392 = vrcp.f32 %v770_v58 }
 0x156   :  { %v1375_v36 = vpop.eup %1374  ;;  %1394 = vrcp.f32 %v778_v24 }
 0x157   :  { %v1682_v32 = vpop.eup %1376  ;;  %1396 = vtanh.f32 %v538_v34  ;;  %v768_v38 = vadd.f32 1.0, %v1375_v36 }
 0x158   :  { %v1379_v40 = vpop.eup %1378  ;;  %1398 = vpow2.f32 %v1037_v33 }
 0x159   :  { %v1381_v41 = vpop.eup %1380  ;;  %1400 = vrcp.f32 %v768_v38  ;;  %v817_v3 = vmul.f32 %v1379_v40, %v1624_v0  ;;  %v1044_v0 = vmul.f32 -1.442695, %v1648_v18 }
 0x15a   :  { %v1383_v43 = vpop.eup %1382  ;;  %1402 = vpow2.f32 %v1045_v27  ;;  %v825_v5 = vmul.f32 %v1381_v41, %v1667_v42 }
 0x15b   :  { %v1689_v45 = vpop.eup %1384  ;;  %v776_v46 = vadd.f32 1.0, %v1383_v43  ;;  %1404 = vpow2.f32 %v1035_v39  ;;  %v833_v47 = vmul.f32 20.0, %v817_v3 }
 0x15c   :  { %v1387_v35 = vpop.eup %1386  ;;  %1406 = vpow2.f32 %v1043_v31  ;;  %v841_v49 = vmul.f32 20.0, %v825_v5 }
 0x15d   :  { %v1389_v52 = vpop.eup %1388  ;;  %1408 = vrcp.f32 %v776_v46  ;;  %v815_v10 = vmul.f32 %v1387_v35, %v1626_v2  ;;  %v851_v14 = vmul.f32 1.442695, %v833_v47 }
 0x15e   :  { %v1695_v48 = vpop.eup %1390  ;;  %1410 = vpow2.f32 %v1038_v44  ;;  %v867_v42 = vmul.f32 1.442695, %v841_v49  ;;  %v823_v56 = vmul.f32 %v1389_v52, %v1672_v53 }
 0x15f   :  { %v1393_v57 = vpop.eup %1392  ;;  %1412 = vpow2.f32 %v1046_v6  ;;  %v831_v50 = vmul.f32 20.0, %v815_v10 }
 0x160   :  { %v1395_v59 = vpop.eup %1394  ;;  %1414 = vpow2.f32 %v1036_v9  ;;  %v818_v15 = vmul.f32 %v1393_v57, %v1634_v7  ;;  %v839_v63 = vmul.f32 20.0, %v823_v56 }
 0x161   :  { %v1699_v60 = vpop.eup %1396  ;;  %1416 = vpow2.f32 %v1044_v0  ;;  %v847_v18 = vmul.f32 1.442695, %v831_v50  ;;  %v826_v2 = vmul.f32 %v1395_v59, %v1676_v4 }
 0x162   :  { %v1399_v61 = vpop.eup %1398  ;;  %1418 = vpow2.f32 %v867_v42  ;;  %v834_v62 = vmul.f32 20.0, %v818_v15  ;;  %v863_v4 = vmul.f32 1.442695, %v839_v63 }
 0x163   :  { %v1401_v53 = vpop.eup %1400  ;;  %v773_v54 = vadd.f32 1.0, %v1399_v61  ;;  %1420 = vpow2.f32 %v851_v14  ;;  %v842_v21 = vmul.f32 20.0, %v826_v2 }
 0x164   :  { %v1403_v1 = vpop.eup %1402  ;;  %1422 = vpow2.f32 %v847_v18  ;;  %v853_v8 = vmul.f32 1.442695, %v834_v62  ;;  %v816_v11 = vmul.f32 %v1401_v53, %v1646_v16 }
 0x165   :  { %v1405_v7 = vpop.eup %1404  ;;  %1424 = vrcp.f32 %v773_v54  ;;  %v781_v55 = vadd.f32 1.0, %v1403_v1  ;;  %v869_v38 = vmul.f32 1.442695, %v842_v21 }
 0x166   :  { %v1407_v12 = vpop.eup %1406  ;;  %v771_v17 = vadd.f32 1.0, %v1405_v7  ;;  %1426 = vpow2.f32 %v853_v8  ;;  %v832_v30 = vmul.f32 20.0, %v816_v11 }
 0x167   :  { %v1409_v13 = vpop.eup %1408  ;;  %1428 = vrcp.f32 %v781_v55  ;;  %v779_v20 = vadd.f32 1.0, %v1407_v12 }
 0x168   :  { %v1411_v25 = vpop.eup %1410  ;;  %1430 = vrcp.f32 %v771_v17  ;;  %v824_v26 = vmul.f32 %v1409_v13, %v1679_v28  ;;  %v849_v3 = vmul.f32 1.442695, %v832_v30 }
 0x169   :  { %v1413_v58 = vpop.eup %1412  ;;  %1432 = vrcp.f32 %v779_v20  ;;  %v774_v16 = vadd.f32 1.0, %v1411_v25 }
 0x16a   :  { %v1415_v24 = vpop.eup %1414  ;;  %v782_v33 = vadd.f32 1.0, %v1413_v58  ;;  %1434 = vpow2.f32 %v863_v4  ;;  %v840_v34 = vmul.f32 20.0, %v824_v26 }
 0x16b   :  { %v1417_v36 = vpop.eup %1416  ;;  %1436 = vrcp.f32 %v774_v16  ;;  %v772_v27 = vadd.f32 1.0, %v1415_v24 }
 0x16c   :  { %v1419_v39 = vpop.eup %1418  ;;  %1438 = vrcp.f32 %v782_v33  ;;  %v780_v40 = vadd.f32 1.0, %v1417_v36  ;;  %v865_v31 = vmul.f32 1.442695, %v840_v34 }
 0x16d   :  { %v1421_v41 = vpop.eup %1420  ;;  %1440 = vrcp.f32 %v772_v27  ;;  %v1709_v28 = vsel %vm881_vm0, %v1419_v39, 0.0 }
 0x16e   :  { %v1423_v43 = vpop.eup %1422  ;;  %1442 = vrcp.f32 %v780_v40  ;;  %918 = vadd.xlane.f32.xlu0 %v1709_v28  ;;  %v1714_v44 = vsel %vm881_vm0, %v1421_v41, 0.0 }
 0x16f   :  { %v1425_v5 = vpop.eup %1424  ;;  %902 = vadd.xlane.f32.xlu1 %v1714_v44  ;;  %1444 = vpow2.f32 %v869_v38  ;;  %v1720_v35 = vsel %vm881_vm0, %v1423_v43, 0.0 }
 0x170   :  { %v1427_v46 = vpop.eup %1426  ;;  %1446 = vpow2.f32 %v865_v31  ;;  %v821_v6 = vmul.f32 %v1425_v5, %v1652_v22 }
 0x171   :  { %v1429_v47 = vpop.eup %1428  ;;  %1448 = vpow2.f32 %v849_v3  ;;  %v1725_v49 = vsel %vm881_vm0, %v1427_v46, 0.0 }
 0x172   :  { %v1431_v9 = vpop.eup %1430  ;;  %898 = vadd.xlane.f32.xlu0 %v1720_v35  ;;  %v837_v52 = vmul.f32 20.0, %v821_v6  ;;  %v829_v0 = vmul.f32 %v1429_v47, %v1682_v32 }
 0x173   :  { %v1433_v10 = vpop.eup %1432  ;;  %904 = vadd.xlane.f32.xlu1 %v1725_v49  ;;  %v819_v22 = vmul.f32 %v1431_v9, %v1654_v23 }
 0x174   :  { %v1435_v42 = vpop.eup %1434  ;;  %v859_v56 = vmul.f32 1.442695, %v837_v52  ;;  %v827_v57 = vmul.f32 %v1433_v10, %v1689_v45  ;;  %v845_v53 = vmul.f32 20.0, %v829_v0 }
 0x175   :  { %v1437_v14 = vpop.eup %1436  ;;  %v1733_v50 = vsel %vm881_vm0, %v1435_v42, 0.0  ;;  %v835_v59 = vmul.f32 20.0, %v819_v22 }
 0x176   :  { %v1439_v15 = vpop.eup %1438  ;;  %914 = vadd.xlane.f32.xlu0 %v1733_v50  ;;  %1450 = vpow2.f32 %v859_v56  ;;  %v822_v32 = vmul.f32 %v1437_v14, %v1658_v29  ;;  %v843_v18 = vmul.f32 20.0, %v827_v57  ;;  %v875_v17 = vmul.f32 1.442695, %v845_v53 }
 0x177   :  { %v1441_v2 = vpop.eup %1440  ;;  %v855_v61 = vmul.f32 1.442695, %v835_v59  ;;  %v830_v23 = vmul.f32 %v1439_v15, %v1695_v48 }
 0x178   :  { %v1443_v51 = vpop.eup %1442  ;;  %v838_v62 = vmul.f32 20.0, %v822_v32  ;;  %v820_v45 = vmul.f32 %v1441_v2, %v1662_v37  ;;  %v871_v63 = vmul.f32 1.442695, %v843_v18 }
 0x179   :  { %v1445_v54 = vpop.eup %1444  ;;  %1452 = vpow2.f32 %v855_v61  ;;  %v828_v1 = vmul.f32 %v1443_v51, %v1699_v60  ;;  %v846_v13 = vmul.f32 20.0, %v830_v23 }
 0x17a   :  { %v1447_v8 = vpop.eup %1446  ;;  %v1742_v11 = vsel %vm881_vm0, %v1445_v54, 0.0  ;;  %v861_v29 = vmul.f32 1.442695, %v838_v62  ;;  %v836_v7 = vmul.f32 20.0, %v820_v45  ;;  %1454 = vpow2.f32 %v871_v63 }
 0x17b   :  { %v1449_v55 = vpop.eup %1448  ;;  %920 = vadd.xlane.f32.xlu1 %v1742_v11  ;;  %v844_v48 = vmul.f32 20.0, %v828_v1  ;;  %v1752_v60 = vsel %vm881_vm0, %v1447_v8, 0.0  ;;  %v877_v25 = vmul.f32 1.442695, %v846_v13 }
 0x17c   :  { %v1747_v37 = vsel %vm881_vm0, %v1449_v55, 0.0  ;;  %1456 = vpow2.f32 %v861_v29  ;;  %v857_v12 = vmul.f32 1.442695, %v836_v7 }
 0x17d   :  { %900 = vadd.xlane.f32.xlu0 %v1747_v37  ;;  %v873_v4 = vmul.f32 1.442695, %v844_v48 }
 0x17e   :  { %1458 = vpow2.f32 %v857_v12 }
 0x17f   :  { %916 = vadd.xlane.f32.xlu1 %v1752_v60  ;;  %1460 = vpow2.f32 %v875_v17 }
 0x180   :  { %v1451_v20 = vpop.eup %1450  ;;  %1462 = vpow2.f32 %v873_v4 }
 0x181   :  { %v1757_v21 = vsel %vm881_vm0, %v1451_v20, 0.0  ;;  %1464 = vpow2.f32 %v877_v25 }
 0x182   :  { %910 = vadd.xlane.f32.xlu0 %v1757_v21 }
 0x183   :  { %v1453_v26 = vpop.eup %1452 }
 0x184   :  { %v1455_v58 = vpop.eup %1454  ;;  %v1762_v16 = vsel %vm881_vm0, %v1453_v26, 0.0 }
 0x185   :  { %v1772_v34 = vsel %vm881_vm0, %v1455_v58, 0.0 }
 0x186   :  { %v1457_v30 = vpop.eup %1456  ;;  %906 = vadd.xlane.f32.xlu0 %v1762_v16 }
 0x187   :  { %v1767_v24 = vsel %vm881_vm0, %v1457_v30, 0.0 }
 0x188   :  { %v1459_v33 = vpop.eup %1458  ;;  %912 = vadd.xlane.f32.xlu1 %v1767_v24 }
 0x189   :  { %v1461_v36 = vpop.eup %1460  ;;  %v1777_v27 = vsel %vm881_vm0, %v1459_v33, 0.0 }
 0x18a   :  { %922 = vadd.xlane.f32.xlu0 %v1772_v34  ;;  %v1463_v38 = vpop.eup %1462  ;;  %v1782_v39 = vsel %vm881_vm0, %v1461_v36, 0.0 }
 0x18b   :  { %v1787_v40 = vsel %vm881_vm0, %v1463_v38, 0.0  ;;  %v1465_v31 = vpop.eup %1464 }
 0x18c   :  { %908 = vadd.xlane.f32.xlu1 %v1777_v27  ;;  %v1792_v41 = vsel %vm881_vm0, %v1465_v31, 0.0 }
 0x18e   :  { %926 = vadd.xlane.f32.xlu0 %v1782_v39 }
 0x190   :  { %924 = vadd.xlane.f32.xlu1 %v1787_v40 }
 0x194   :  { %928 = vadd.xlane.f32.xlu1 %v1792_v41 }
 0x1fb   :  { %v919_v3 = vpop.xlane.xlu0 %918 }
 0x1fc   :  { %1466 = vrcp.f32 %v919_v3  ;;  %v903_v43 = vpop.xlane.xlu1 %902 }
 0x1fd   :  { %1468 = vrcp.f32 %v903_v43 }
 0x1ff   :  { %v899_v5 = vpop.xlane.xlu0 %898 }
 0x200   :  { %1470 = vrcp.f32 %v899_v5  ;;  %v905_v46 = vpop.xlane.xlu1 %904 }
 0x201   :  { %1472 = vrcp.f32 %v905_v46 }
 0x203   :  { %v915_v6 = vpop.xlane.xlu0 %914 }
 0x204   :  { %1474 = vrcp.f32 %v915_v6 }
 0x206   :  { %v1467_v47 = vpop.eup %1466 }
 0x207   :  { %v1469_v9 = vpop.eup %1468  ;;  %v956_v52 = vmul.f32 %v1467_v47, %v1709_v28 }
 0x208   :  { %v948_v19 = vmul.f32 %v1469_v9, %v1714_v44  ;;  %v921_v0 = vpop.xlane.xlu1 %920 }
 0x209   :  { %972 = vst [vmem:[%s1861_s2 + $0x50] sm:$0xff] %v956_v52  ;;  %1476 = vrcp.f32 %v921_v0 }
 0x20a   :  { %v1471_v10 = vpop.eup %1470  ;;  %964 = vst [vmem:[%s1861_s2 + $0x10] sm:$0xff] %v948_v19  ;;  %v901_v22 = vpop.xlane.xlu0 %900 }
 0x20b   :  { %v1473_v42 = vpop.eup %1472  ;;  %v946_v56 = vmul.f32 %v1471_v10, %v1720_v35  ;;  %1478 = vrcp.f32 %v901_v22 }
 0x20c   :  { %v949_v28 = vmul.f32 %v1473_v42, %v1725_v49  ;;  %v917_v57 = vpop.xlane.xlu1 %916 }
 0x20d   :  { %962 = vst [vmem:[%s1861_s2] sm:$0xff] %v946_v56  ;;  %1480 = vrcp.f32 %v917_v57 }
 0x20e   :  { %v1475_v44 = vpop.eup %1474  ;;  %965 = vst [vmem:[%s1861_s2 + $0x18] sm:$0xff] %v949_v28 }
 0x20f   :  { %v954_v14 = vmul.f32 %v1475_v44, %v1733_v50  ;;  %v911_v59 = vpop.xlane.xlu0 %910 }
 0x210   :  { %1482 = vrcp.f32 %v911_v59 }
 0x211   :  { %970 = vst [vmem:[%s1861_s2 + $0x40] sm:$0xff] %v954_v14 }
 0x213   :  { %v1477_v35 = vpop.eup %1476  ;;  %v907_v49 = vpop.xlane.xlu0 %906 }
 0x214   :  { %v957_v15 = vmul.f32 %v1477_v35, %v1742_v11  ;;  %1484 = vrcp.f32 %v907_v49 }
 0x215   :  { %v1479_v32 = vpop.eup %1478  ;;  %v913_v18 = vpop.xlane.xlu1 %912 }
 0x216   :  { %973 = vst [vmem:[%s1861_s2 + $0x58] sm:$0xff] %v957_v15  ;;  %v947_v2 = vmul.f32 %v1479_v32, %v1747_v37  ;;  %1486 = vrcp.f32 %v913_v18 }
 0x217   :  { %v1481_v50 = vpop.eup %1480  ;;  %v923_v61 = vpop.xlane.xlu0 %922 }
 0x218   :  { %v955_v23 = vmul.f32 %v1481_v50, %v1752_v60  ;;  %963 = vst [vmem:[%s1861_s2 + $0x8] sm:$0xff] %v947_v2  ;;  %1488 = vrcp.f32 %v923_v61 }
 0x219   :  { %v909_v51 = vpop.xlane.xlu1 %908 }
 0x21a   :  { %v1483_v62 = vpop.eup %1482  ;;  %971 = vst [vmem:[%s1861_s2 + $0x48] sm:$0xff] %v955_v23  ;;  %1490 = vrcp.f32 %v909_v51 }
 0x21b   :  { %v952_v45 = vmul.f32 %v1483_v62, %v1757_v21  ;;  %v927_v63 = vpop.xlane.xlu0 %926 }
 0x21c   :  { %1492 = vrcp.f32 %v927_v63 }
 0x21d   :  { %968 = vst [vmem:[%s1861_s2 + $0x30] sm:$0xff] %v952_v45  ;;  %v925_v53 = vpop.xlane.xlu1 %924 }
 0x21e   :  { %v1485_v54 = vpop.eup %1484  ;;  %1494 = vrcp.f32 %v925_v53 }
 0x21f   :  { %v950_v1 = vmul.f32 %v1485_v54, %v1762_v16 }
 0x220   :  { %v1487_v8 = vpop.eup %1486 }
 0x221   :  { %v953_v11 = vmul.f32 %v1487_v8, %v1767_v24  ;;  %966 = vst [vmem:[%s1861_s2 + $0x20] sm:$0xff] %v950_v1  ;;  %v929_v29 = vpop.xlane.xlu1 %928 }
 0x222   :  { %v1489_v7 = vpop.eup %1488  ;;  %1496 = vrcp.f32 %v929_v29 }
 0x223   :  { %969 = vst [vmem:[%s1861_s2 + $0x38] sm:$0xff] %v953_v11  ;;  %v958_v55 = vmul.f32 %v1489_v7, %v1772_v34 }
 0x224   :  { %v1491_v48 = vpop.eup %1490 }
 0x225   :  { %v951_v37 = vmul.f32 %v1491_v48, %v1777_v27  ;;  %974 = vst [vmem:[%s1861_s2 + $0x60] sm:$0xff] %v958_v55 }
 0x226   :  { %v1493_v12 = vpop.eup %1492 }
 0x227   :  { %967 = vst [vmem:[%s1861_s2 + $0x28] sm:$0xff] %v951_v37  ;;  %v960_v17 = vmul.f32 %v1493_v12, %v1782_v39 }
 0x228   :  { %v1495_v60 = vpop.eup %1494 }
 0x229   :  { %v959_v4 = vmul.f32 %v1495_v60, %v1787_v40  ;;  %976 = vst [vmem:[%s1861_s2 + $0x70] sm:$0xff] %v960_v17 }
 0x22b   :  { %975 = vst [vmem:[%s1861_s2 + $0x68] sm:$0xff] %v959_v4 }
 0x22c   :  { %v1497_v13 = vpop.eup %1496 }
 0x22d   :  { %v961_v20 = vmul.f32 %v1497_v13, %v1792_v41 }
 0x22f   :  { %977 = vst [vmem:[%s1861_s2 + $0x78] sm:$0xff] %v961_v20 }
 0x230   :  { %982 = vsyncpa [#allocation3], 1 }

</bundles_post_ra>
